<compile_context>
chip_gen: v6e
topology: v6e:2x2x1
jax: 0.10.0
libtpu: 0.0.40
codegen_flags: <defaults>
</compile_context>

<pallas_src>
import functools
import math

import jax
import jax.numpy as jnp
from jax.experimental import pallas as pl
from jax.experimental.pallas import tpu as pltpu


def layernorm_kernel(x_ref, alpha_ref, bias_ref, o_ref, *, eps, features):
    x = x_ref[...].astype(jnp.float32)                        # (tm, F)

    mean = jnp.mean(x, axis=-1, keepdims=True)                # (tm, 1)
    diff = x - mean
    # torch.std uses Bessel's correction: divide by (N - 1).
    var = jnp.sum(diff * diff, axis=-1, keepdims=True) * jnp.float32(
        1.0 / (features - 1) if features > 1 else jnp.inf)
    std = jnp.sqrt(var)

    # Per-row reciprocal on the (tm, 1) column (EUP), then one multiply per
    # element, instead of tm*F VPU divides.
    inv = pl.reciprocal(std + jnp.float32(eps), approx=False)  # (tm, 1)

    alpha = alpha_ref[...].astype(jnp.float32)                 # (1, F)
    bias = bias_ref[...].astype(jnp.float32)                   # (1, F)

    y = (diff * inv) * alpha + bias
    o_ref[...] = y.astype(o_ref.dtype)


def _pick_row_tile(M, features, itemsize, *, target_bytes=2 << 20, max_rows=4096):
    """Return (tm_eff, M_padded).  Prefers a sublane-aligned divisor of M so no
    padding copy is ever made; pads only for ragged, non-aligned M."""
    sublane = {4: 8, 2: 16, 1: 32}.get(itemsize, 8)
    tm = target_bytes // max(1, features * itemsize)
    tm = max(sublane, min(max_rows, tm))
    tm = (tm // sublane) * sublane

    if tm >= M:
        # Whole problem in a single tile: block == full array dims, always legal.
        return M, M

    if M % sublane == 0:
        cand = tm
        while cand >= sublane:
            if M % cand == 0:
                return cand, M
            cand -= sublane

    # Last resort (M not a multiple of the sublane count): pad rows.
    m_pad = pl.cdiv(M, tm) * tm
    return tm, m_pad


def layer_normalization(x, alpha, bias, *, eps=1e-6):
    """LayerNorm over the last dim. x: (..., features) -> same shape."""
    orig_shape = x.shape
    features = orig_shape[-1]
    M = math.prod(orig_shape[:-1])

    x2 = x.reshape(M, features)
    alpha2 = alpha.reshape(1, features)
    bias2 = bias.reshape(1, features)

    tm_eff, M_pad = _pick_row_tile(M, features, x.dtype.itemsize)
    if M_pad != M:
        # Zero rows normalize to zero (0 * 1/eps), so padding is safe.
        x2 = jnp.pad(x2, ((0, M_pad - M), (0, 0)))

    bytes_accessed = (2 * M_pad * features + 2 * features) * x.dtype.itemsize
    cost = pl.CostEstimate(
        flops=8 * M_pad * features,          # sub, sq, sum, mul, mul, add, ...
        transcendentals=2 * M_pad,           # sqrt + reciprocal per row
        bytes_accessed=bytes_accessed,
    )

    out = pl.pallas_call(
        functools.partial(layernorm_kernel, eps=eps, features=features),
        out_shape=jax.ShapeDtypeStruct((M_pad, features), x.dtype),
        grid_spec=pltpu.PrefetchScalarGridSpec(
            num_scalar_prefetch=0,
            grid=(M_pad // tm_eff,),
            in_specs=[
                pl.BlockSpec((tm_eff, features), lambda i: (i, 0)),  # x rows
                pl.BlockSpec((1, features), lambda i: (0, 0)),       # alpha
                pl.BlockSpec((1, features), lambda i: (0, 0)),       # bias
            ],
            out_specs=pl.BlockSpec((tm_eff, features), lambda i: (i, 0)),
        ),
        compiler_params=pltpu.CompilerParams(
            dimension_semantics=("parallel",),
            # ~2 MiB tiles * (2 in + 2 out double-buffers) + f32 intermediates
            # fit comfortably; 48 MiB leaves headroom even on v7x (64 MiB VMEM)
            # while lifting v5e/v6e above their 16/32 MiB default scoped limits.
            vmem_limit_bytes=48 * 1024 * 1024,
        ),
        cost_estimate=cost,
    )(x2, alpha2, bias2)

    if M_pad != M:
        out = out[:M]
    return out.reshape(orig_shape)


def reference_layer_norm(x, alpha, bias, eps=1e-6):
    mean = jnp.mean(x, axis=-1, keepdims=True)
    std = jnp.std(x, axis=-1, keepdims=True, ddof=1)  # Bessel, like torch.std
    return alpha * (x - mean) / (std + eps) + bias


if __name__ == "__main__":
    batch, seq, features = 2, 8, 128

    key = jax.random.PRNGKey(0)
    kx, ka, kb = jax.random.split(key, 3)
    x = jax.random.normal(kx, (batch, seq, features), dtype=jnp.float32)
    # Module defaults are ones/zeros; use non-trivial values to exercise the
    # affine part as well.
    alpha = 1.0 + 0.1 * jax.random.normal(ka, (features,), dtype=jnp.float32)
    bias = 0.1 * jax.random.normal(kb, (features,), dtype=jnp.float32)

    y = layer_normalization(x, alpha, bias, eps=1e-6)
    y = jax.block_until_ready(y)

    y_ref = reference_layer_norm(x, alpha, bias, eps=1e-6)
    assert y.shape == (batch, seq, features)
    assert jnp.allclose(y, y_ref, atol=1e-5, rtol=1e-5), (
        float(jnp.max(jnp.abs(y - y_ref)))
    )

    print("KERNEL_OK")
</pallas_src>

<mosaic_0001>
module attributes {stable_mosaic.version = 11 : i64} {
  func.func @layernorm_kernel(%arg0: i32, %arg1: memref<16x128xf32, #tpu.memory_space<vmem>>, %arg2: memref<1x128xf32, #tpu.memory_space<vmem>>, %arg3: memref<1x128xf32, #tpu.memory_space<vmem>>, %arg4: memref<16x128xf32, #tpu.memory_space<vmem>>) attributes {dimension_semantics = [#tpu.dimension_semantics<parallel>], iteration_bounds = array<i64: 1>, scalar_prefetch = 0 : i64, scratch_operands = 0 : i64, tpu.core_type = #tpu.core_type<tc>, window_params = [{transform_indices = @transform_0, window_bounds = array<i64: 16, 128>}, {pipeline_mode = #tpu.pipeline_mode<synchronous>, transform_indices = @transform_1, window_bounds = array<i64: 1, 128>}, {pipeline_mode = #tpu.pipeline_mode<synchronous>, transform_indices = @transform_2, window_bounds = array<i64: 1, 128>}, {transform_indices = @transform_3, window_bounds = array<i64: 16, 128>}]} {
    %c0 = arith.constant 0 : index
    %c0_0 = arith.constant 0 : index
    %0 = vector.load %arg1[%c0, %c0_0] : memref<16x128xf32, #tpu.memory_space<vmem>>, vector<16x128xf32>
    %cst = arith.constant dense<0.000000e+00> : vector<16xf32>
    %1 = vector.multi_reduction <add>, %0, %cst [1] : vector<16x128xf32> to vector<16xf32>
    %2 = vector.shape_cast %1 : vector<16xf32> to vector<16x1xf32>
    %cst_1 = arith.constant 1.280000e+02 : f32
    %3 = vector.broadcast %cst_1 : f32 to vector<16x1xf32>
    %4 = arith.divf %2, %3 : vector<16x1xf32>
    %5 = vector.broadcast %4 : vector<16x1xf32> to vector<16x128xf32>
    %6 = arith.subf %0, %5 : vector<16x128xf32>
    %7 = arith.mulf %6, %6 : vector<16x128xf32>
    %cst_2 = arith.constant dense<0.000000e+00> : vector<16xf32>
    %8 = vector.multi_reduction <add>, %7, %cst_2 [1] : vector<16x128xf32> to vector<16xf32>
    %9 = vector.shape_cast %8 : vector<16xf32> to vector<16x1xf32>
    %cst_3 = arith.constant 0.00787401571 : f32
    %10 = vector.broadcast %cst_3 : f32 to vector<16x1xf32>
    %11 = arith.mulf %9, %10 : vector<16x1xf32>
    %12 = math.sqrt %11 : vector<16x1xf32>
    %cst_4 = arith.constant 9.99999997E-7 : f32
    %13 = vector.broadcast %cst_4 : f32 to vector<16x1xf32>
    %14 = arith.addf %12, %13 : vector<16x1xf32>
    %15 = tpu.reciprocal %14 : vector<16x1xf32> -> vector<16x1xf32>
    %c0_5 = arith.constant 0 : index
    %c0_6 = arith.constant 0 : index
    %16 = vector.load %arg2[%c0_5, %c0_6] : memref<1x128xf32, #tpu.memory_space<vmem>>, vector<1x128xf32>
    %c0_7 = arith.constant 0 : index
    %c0_8 = arith.constant 0 : index
    %17 = vector.load %arg3[%c0_7, %c0_8] : memref<1x128xf32, #tpu.memory_space<vmem>>, vector<1x128xf32>
    %18 = vector.broadcast %15 : vector<16x1xf32> to vector<16x128xf32>
    %19 = arith.mulf %6, %18 : vector<16x128xf32>
    %20 = vector.broadcast %16 : vector<1x128xf32> to vector<16x128xf32>
    %21 = arith.mulf %19, %20 : vector<16x128xf32>
    %22 = vector.broadcast %17 : vector<1x128xf32> to vector<16x128xf32>
    %23 = arith.addf %21, %22 : vector<16x128xf32>
    %c0_9 = arith.constant 0 : index
    %c0_10 = arith.constant 0 : index
    %24 = vector.load %arg4[%c0_9, %c0_10] : memref<16x128xf32, #tpu.memory_space<vmem>>, vector<16x128xf32>
    tpu.vector_store %arg4[%c0_9, %c0_10], %23 {strides = array<i32>} : memref<16x128xf32, #tpu.memory_space<vmem>>, vector<16x128xf32>,
    return
  }
  func.func @transform_0(%arg0: i32) -> (i32, i32) {
    %c0_i32 = arith.constant 0 : i32
    %c0_i32_0 = arith.constant 0 : i32
    return %arg0, %c0_i32 : i32, i32
  }
  func.func @transform_1(%arg0: i32) -> (i32, i32) {
    %c0_i32 = arith.constant 0 : i32
    %c0_i32_0 = arith.constant 0 : i32
    %c0_i32_1 = arith.constant 0 : i32
    return %c0_i32, %c0_i32_0 : i32, i32
  }
  func.func @transform_2(%arg0: i32) -> (i32, i32) {
    %c0_i32 = arith.constant 0 : i32
    %c0_i32_0 = arith.constant 0 : i32
    %c0_i32_1 = arith.constant 0 : i32
    return %c0_i32, %c0_i32_0 : i32, i32
  }
  func.func @transform_3(%arg0: i32) -> (i32, i32) {
    %c0_i32 = arith.constant 0 : i32
    %c0_i32_0 = arith.constant 0 : i32
    return %arg0, %c0_i32 : i32, i32
  }
}

</mosaic_0001>

<bundles_post_ra>
// kernel: tpu_custom_call.1
= control target key start
LH: loop header
LB: loop body
LE: loop exit
PB: predicated region body
PF: predicated region fallthrough
CT: control target
= control target key end

     0   :  { %8 = vsyncpa [#allocation3], 0  ;;  %s205_s0 = inlined_call_operand.hbm [shape: f32[16,128], index: 0, kind: input, shape index: {}]   ;;  %s206_s1 = inlined_call_operand.vmem [shape: f32[1,128], index: 1, kind: input, shape index: {}]   ;;  %s207_s2 = inlined_call_operand.vmem [shape: f32[1,128], index: 2, kind: input, shape index: {}]   ;;  %s208_s3 = inlined_call_operand.hbm [shape: f32[16,128], index: 3, kind: output, shape index: {}]  }
   0x1   :  { %9 = vsyncpa [#allocation4], 0  ;;  %s163_s12 = smov [#allocation2]  }
   0x2   :  { %s15_s13 = sshll.u32 %s163_s12, 4  ;;  %s16_s13 = int_to_ptr.vmem [resolvable:$true] %s15_s13 }
   0x3   :  { %s127_s14 = scalar_lea.vmem %s16_s13, 256  ;;  %p132_p1 = scmp.lt.s32.totalorder %s16_s13, %s16_s13 }
   0x4   :  { %p128_p0 = scmp.ne.s32.totalorder %s16_s13, %s127_s14  ;;  %p133_p2 = scmp.lt.s32.totalorder %s127_s14, %s127_s14 }
   0x6   :  { %p134_p3 = por %p133_p2, %p132_p1 }
   0x8   :  { %p135_p4 = pnand %p134_p3, %p128_p0 }
   0xa   :  { %138 = shalt.err (!%p135_p4)
}
   0xb   :  { %s164_s15 = smov 128   ;;  %s165_s16 = smov 8  }
   0xc   :  { %21 = dma.hbm_to_vmem [thread:$0]  %s205_s0, 256, %s16_s13, [#allocation3], %s164_s15, %s164_s15, %s165_s16  }
   0xd   :  { %159 = dma.done.wait [#allocation3], 256  }
   0xe   :  { %160 = vsyncadd [#allocation3], 4294967040  ;;  %v29_v0 = vld [vmem:[#allocation2] sm:$0xff]  ;;  %v30_v1 = vld [vmem:[#allocation2 + $0x8] sm:$0xff]  ;;  %s166_s22 = smov [#allocation5]  }
   0xf   :  { %31 = vadd.xlane.f32.xlu0 %v29_v0  ;;  %v105_v27 = vld [vmem:[%s206_s1] ss:$0 sm:$0xff]  ;;  %s93_s23 = sshll.u32 %s166_s22, 4  ;;  %s94_s23 = int_to_ptr.vmem [resolvable:$true] %s93_s23 }
  0x10   :  { %v106_v29 = vld [vmem:[%s207_s2] ss:$0 sm:$0xff]  ;;  %s139_s24 = scalar_lea.vmem %s94_s23, 256  ;;  %p144_p6 = scmp.lt.s32.totalorder %s94_s23, %s94_s23 }
  0x11   :  { %p140_p5 = scmp.ne.s32.totalorder %s94_s23, %s139_s24  ;;  %p145_p7 = scmp.lt.s32.totalorder %s139_s24, %s139_s24 }
  0x13   :  { %33 = vadd.xlane.f32.xlu0 %v30_v1  ;;  %p146_p8 = por %p145_p7, %p144_p6 }
  0x15   :  { %p147_p9 = pnand %p146_p8, %p140_p5 }
  0x98   :  { %v32_v2 = vpop.xlane.xlu0 %31 }
  0x99   :  { %v36_v3 = vmul.f32 0.0078125, %v32_v2 }
  0x9b   :  { %v38_v4 = vsub.f32 %v29_v0, %v36_v3 }
  0x9c   :  { %v34_v5 = vpop.xlane.xlu0 %33 }
  0x9d   :  { %v37_v6 = vmul.f32 0.0078125, %v34_v5  ;;  %v40_v7 = vmul.f32 %v38_v4, %v38_v4 }
  0x9f   :  { %v39_v8 = vsub.f32 %v30_v1, %v37_v6  ;;  %42 = vadd.xlane.f32.xlu1 %v40_v7 }
  0xa1   :  { %v41_v9 = vmul.f32 %v39_v8, %v39_v8 }
  0xa3   :  { %44 = vadd.xlane.f32.xlu1 %v41_v9 }
 0x128   :  { %v43_v10 = vpop.xlane.xlu1 %42 }
 0x129   :  { %v46_v11 = vmul.f32 0.007874016, %v43_v10 }
 0x12b   :  { %111 = vrsqrt.f32 %v46_v11  ;;  %vm50_vm0 = vcmp.eq.f32.partialorder %v46_v11, inf  ;;  %v53_v16 = vand.u32 2147483648, %v46_v11  ;;  %vm52_vm1 = vcmp.eq.f32.partialorder %v46_v11, 0.0 }
 0x12c   :  { %v45_v12 = vpop.xlane.xlu1 %44 }
 0x12d   :  { %v47_v13 = vmul.f32 0.007874016, %v45_v12 }
 0x12f   :  { %113 = vrsqrt.f32 %v47_v13  ;;  %vm57_vm2 = vcmp.eq.f32.partialorder %v47_v13, inf  ;;  %v60_v22 = vand.u32 2147483648, %v47_v13  ;;  %vm59_vm3 = vcmp.eq.f32.partialorder %v47_v13, 0.0 }
 0x138   :  { %v112_v14 = vpop.eup %111 }
 0x139   :  { %v49_v15 = vmul.f32 %v112_v14, %v46_v11 }
 0x13b   :  { %v51_v17 = vsel %vm50_vm0, %v46_v11, %v49_v15 }
 0x13c   :  { %v114_v18 = vpop.eup %113  ;;  %v54_v19 = vsel %vm52_vm1, %v53_v16, %v51_v17 }
 0x13d   :  { %v62_v20 = vadd.f32 1e-06, %v54_v19  ;;  %v56_v21 = vmul.f32 %v114_v18, %v47_v13 }
 0x13f   :  { %115 = vrcp.f32 %v62_v20  ;;  %v58_v23 = vsel %vm57_vm2, %v47_v13, %v56_v21 }
 0x140   :  { %v61_v24 = vsel %vm59_vm3, %v60_v22, %v58_v23 }
 0x141   :  { %v63_v25 = vadd.f32 1e-06, %v61_v24 }
 0x143   :  { %117 = vrcp.f32 %v63_v25 }
 0x14c   :  { %v116_v26 = vpop.eup %115 }
 0x14d   :  { %v68_v28 = vmul.f32 %v116_v26, %v38_v4 }
 0x14f   :  { %v76_v30 = vmul.f32 %v105_v27, %v68_v28 }
 0x150   :  { %v118_v31 = vpop.eup %117 }
 0x151   :  { %v69_v32 = vmul.f32 %v118_v31, %v39_v8  ;;  %v84_v33 = vadd.f32 %v106_v29, %v76_v30 }
 0x153   :  { %v77_v34 = vmul.f32 %v105_v27, %v69_v32  ;;  %86 = vst [vmem:[#allocation5] sm:$0xff] %v84_v33 }
 0x155   :  { %v85_v35 = vadd.f32 %v106_v29, %v77_v34 }
 0x157   :  { %87 = vst [vmem:[#allocation5 + $0x8] sm:$0xff] %v85_v35 }
 0x158   :  { %150 = shalt.err (!%p147_p9)
}
 0x159   :  { %99 = dma.vmem_to_hbm [thread:$0]  %s94_s23, 256, %s208_s3, [#allocation4], %s164_s15, %s164_s15, %s165_s16  }
 0x15a   :  { %161 = dma.done.wait [#allocation4], 256  }
 0x15b   :  { %162 = vsyncadd [#allocation4], 4294967040 }
 0x15c   :  { %103 = vsyncpa [#allocation3], 1 }
 0x15d   :  { %104 = vsyncpa [#allocation4], 1 }

</bundles_post_ra>
